<compile_context>
chip_gen: v7x
topology: tpu7x:2x2x1
jax: 0.10.0
libtpu: 0.0.40
codegen_flags: <defaults>
</compile_context>

<pallas_src>
import functools

import jax
import jax.numpy as jnp
from jax.experimental import pallas as pl
from jax.experimental.pallas import tpu as pltpu


def _focal_kernel(x_ref, t_ref, o_ref, *, gamma, alpha_vals, num_classes):
    j = pl.program_id(1)

    @pl.when(j == 0)
    def _():
        o_ref[...] = jnp.zeros_like(o_ref)

    C = num_classes
    t = t_ref[...]                                  # (TS, 128) int32 targets

    # Per-class rows of the logits block; each is a lane-dense (TS, 128) tile.
    rows = [x_ref[k].astype(jnp.float32) for k in range(C)]

    # log_softmax along the class axis, unrolled over C (full-width VPU/EUP).
    m = rows[0]
    for k in range(1, C):
        m = jnp.maximum(m, rows[k])
    z = [rows[k] - m for k in range(C)]
    e = [jnp.exp(zk) for zk in z]
    sum_exp = e[0]
    for k in range(1, C):
        sum_exp = sum_exp + e[k]

    # gather(1, target) and alpha.gather(0, target) as per-class selects.
    # NOTE: target ids >= len(alpha) silently get alpha_t = 0 here (torch's
    # alpha.gather would raise an out-of-range error instead).
    num_alpha = len(alpha_vals)
    z_t = jnp.zeros_like(m)
    e_t = jnp.zeros_like(m)
    a_t = jnp.zeros_like(m)
    for k in range(max(C, num_alpha)):
        sel = t == k
        if k < C:
            z_t = jnp.where(sel, z[k], z_t)
            e_t = jnp.where(sel, e[k], e_t)
        if k < num_alpha:
            a_t = jnp.where(sel, jnp.float32(alpha_vals[k]), a_t)

    logpt = z_t - jnp.log(sum_exp)                  # log p_t
    pt = e_t * pl.reciprocal(sum_exp)               # p_t (reuses exp(z_t))

    # (1 - pt) ** gamma  (repeated multiply for integer gamma -- exact & cheap)
    one_minus_pt = 1.0 - pt
    g = float(gamma)
    if g.is_integer() and g >= 0:
        w = jnp.ones_like(one_minus_pt)
        for _ in range(int(g)):
            w = w * one_minus_pt
    else:
        w = jnp.power(one_minus_pt, g)

    # loss = -(1 - pt)^gamma * alpha_t * log p_t
    # Accumulate lane-dense per-element partial sums into the resident output
    # block; the scalar reduction happens once, outside the kernel.
    o_ref[...] -= w * (a_t * logpt)


def _pick_s_tile(S, C):
    """Largest legal sublane tile (multiple of 8, or full extent) with a
    logits block of roughly <= 2 MB."""
    cap = max(8, min(512, (2 * 1024 * 1024) // (C * 128 * 4)))
    if S <= cap:
        return S
    t = (cap // 8) * 8
    while t >= 8:
        if S % t == 0:
            return t
        t -= 8
    # TODO(synk): pad S for shapes with no multiple-of-8 divisor <= cap.
    return S


def focal_loss(logits, target, alpha=0.25, gamma=2.0, size_average=True):
    """Pallas FocalLoss forward. logits: (N, C, H, W) float, target: (N, H, W) int."""
    # alpha setup mirrors the torch __init__ (constructor constants -> baked).
    if isinstance(alpha, (float, int)):
        alpha_vals = (float(alpha), 1.0 - float(alpha))
    elif isinstance(alpha, (list, tuple)):
        alpha_vals = tuple(float(v) for v in alpha)
    else:  # concrete array-like
        import numpy as _np
        alpha_vals = tuple(float(v) for v in _np.asarray(alpha).reshape(-1))

    N, C, H, W = logits.shape
    HW = H * W
    # TODO(synk): pad H*W (and mask padded rows out of sum & divisor) when not
    #             a multiple of 128; C==1 sigmoid branch and ignore_label
    #             filtering are not implemented.
    assert HW % 128 == 0, "H*W must be a multiple of 128 for this kernel"
    S = HW // 128
    s_tile = _pick_s_tile(S, C)
    J = S // s_tile
    M = N * HW

    # Zero-copy views of the NCHW logits / NHW target.
    x = logits.reshape(N, C, S, 128)
    t = target.reshape(N, S, 128).astype(jnp.int32)

    kernel = functools.partial(
        _focal_kernel,
        gamma=float(gamma),
        alpha_vals=alpha_vals,
        num_classes=C,
    )

    partials = pl.pallas_call(
        kernel,
        out_shape=jax.ShapeDtypeStruct((N, s_tile, 128), jnp.float32),
        grid=(N, J),
        in_specs=[
            # logits block: all C classes for a lane-dense spatial tile.
            pl.BlockSpec((None, C, s_tile, 128), lambda n, j: (n, 0, j, 0)),
            # matching target tile.
            pl.BlockSpec((None, s_tile, 128), lambda n, j: (n, j, 0)),
        ],
        # Per-image resident accumulator block (lane-dense, written in VMEM).
        out_specs=pl.BlockSpec((None, s_tile, 128), lambda n, j: (n, 0, 0)),
        compiler_params=pltpu.CompilerParams(
            dimension_semantics=("parallel", "arbitrary"),
            vmem_limit_bytes=32 * 1024 * 1024,
        ),
    )(x, t)

    total = jnp.sum(partials)
    if size_average:
        total = total / jnp.float32(M)
    return total


def _ref_focal(logits, target, alpha_vec, gamma, size_average):
    N, C, H, W = logits.shape
    x = jnp.transpose(logits, (0, 2, 3, 1)).reshape(-1, C)
    t = target.reshape(-1)
    logp = jax.nn.log_softmax(x, axis=1)
    logpt = jnp.take_along_axis(logp, t[:, None], axis=1)[:, 0]
    pt = jnp.exp(logpt)
    at = alpha_vec[t]
    logpt = logpt * at
    loss = -1.0 * (1.0 - pt) ** gamma * logpt
    return loss.mean() if size_average else loss.sum()


if __name__ == "__main__":
    key = jax.random.PRNGKey(0)
    k1, k2 = jax.random.split(key)
    N, C, H, W = 2, 4, 16, 16
    logits = jax.random.normal(k1, (N, C, H, W), dtype=jnp.float32)
    target = jax.random.randint(k2, (N, H, W), 0, C, dtype=jnp.int32)

    # deterministic "parameters" (alpha list branch of __init__), gamma=2
    alpha = [0.1, 0.2, 0.3, 0.4]
    gamma = 2.0

    out = focal_loss(logits, target, alpha=alpha, gamma=gamma, size_average=True)
    out = jax.block_until_ready(out)

    ref = _ref_focal(logits, target, jnp.asarray(alpha, jnp.float32), gamma, True)
    assert jnp.allclose(out, ref, atol=1e-5, rtol=1e-5), (out, ref)
    print("KERNEL_OK")
</pallas_src>

<mosaic_0001>
module attributes {stable_mosaic.version = 11 : i64} {
  func.func @_focal_kernel(%arg0: i32, %arg1: i32, %arg2: memref<1x4x2x128xf32, #tpu.memory_space<vmem>>, %arg3: memref<1x2x128xi32, #tpu.memory_space<vmem>>, %arg4: memref<1x2x128xf32, #tpu.memory_space<vmem>>) attributes {dimension_semantics = [#tpu.dimension_semantics<parallel>, #tpu.dimension_semantics<arbitrary>], iteration_bounds = array<i64: 2, 1>, scalar_prefetch = 0 : i64, scratch_operands = 0 : i64, tpu.core_type = #tpu.core_type<tc>, window_params = [{transform_indices = @transform_0, window_bounds = array<i64: 1, 4, 2, 128>}, {transform_indices = @transform_1, window_bounds = array<i64: 1, 2, 128>}, {transform_indices = @transform_2, window_bounds = array<i64: 1, 2, 128>}]} {
    %c0_i32 = arith.constant 0 : i32
    %0 = arith.cmpi eq, %arg1, %c0_i32 : i32
    %1 = arith.extui %0 : i1 to i32
    %c0_i32_0 = arith.constant 0 : i32
    %2 = arith.cmpi ne, %1, %c0_i32_0 : i32
    scf.if %2 {
      %cst_31 = arith.constant 0.000000e+00 : f32
      %71 = vector.broadcast %cst_31 : f32 to vector<2x128xf32>
      %c0_32 = arith.constant 0 : index
      %c0_33 = arith.constant 0 : index
      %c0_34 = arith.constant 0 : index
      %72 = vector.load %arg4[%c0_32, %c0_33, %c0_34] : memref<1x2x128xf32, #tpu.memory_space<vmem>>, vector<1x2x128xf32>
      %73 = vector.shape_cast %72 : vector<1x2x128xf32> to vector<2x128xf32>
      %74 = vector.shape_cast %71 : vector<2x128xf32> to vector<1x2x128xf32>
      tpu.vector_store %arg4[%c0_32, %c0_33, %c0_34], %74 {strides = array<i32>} : memref<1x2x128xf32, #tpu.memory_space<vmem>>, vector<1x2x128xf32>,
    } else {
    }
    %c0 = arith.constant 0 : index
    %c0_1 = arith.constant 0 : index
    %c0_2 = arith.constant 0 : index
    %3 = vector.load %arg3[%c0, %c0_1, %c0_2] : memref<1x2x128xi32, #tpu.memory_space<vmem>>, vector<1x2x128xi32>
    %4 = vector.shape_cast %3 : vector<1x2x128xi32> to vector<2x128xi32>
    %c0_3 = arith.constant 0 : index
    %c0_4 = arith.constant 0 : index
    %c0_5 = arith.constant 0 : index
    %c0_6 = arith.constant 0 : index
    %5 = vector.load %arg2[%c0_3, %c0_4, %c0_5, %c0_6] : memref<1x4x2x128xf32, #tpu.memory_space<vmem>>, vector<1x1x2x128xf32>
    %6 = vector.shape_cast %5 : vector<1x1x2x128xf32> to vector<2x128xf32>
    %c0_7 = arith.constant 0 : index
    %c1 = arith.constant 1 : index
    %c0_8 = arith.constant 0 : index
    %c0_9 = arith.constant 0 : index
    %7 = vector.load %arg2[%c0_7, %c1, %c0_8, %c0_9] : memref<1x4x2x128xf32, #tpu.memory_space<vmem>>, vector<1x1x2x128xf32>
    %8 = vector.shape_cast %7 : vector<1x1x2x128xf32> to vector<2x128xf32>
    %c0_10 = arith.constant 0 : index
    %c2 = arith.constant 2 : index
    %c0_11 = arith.constant 0 : index
    %c0_12 = arith.constant 0 : index
    %9 = vector.load %arg2[%c0_10, %c2, %c0_11, %c0_12] : memref<1x4x2x128xf32, #tpu.memory_space<vmem>>, vector<1x1x2x128xf32>
    %10 = vector.shape_cast %9 : vector<1x1x2x128xf32> to vector<2x128xf32>
    %c0_13 = arith.constant 0 : index
    %c3 = arith.constant 3 : index
    %c0_14 = arith.constant 0 : index
    %c0_15 = arith.constant 0 : index
    %11 = vector.load %arg2[%c0_13, %c3, %c0_14, %c0_15] : memref<1x4x2x128xf32, #tpu.memory_space<vmem>>, vector<1x1x2x128xf32>
    %12 = vector.shape_cast %11 : vector<1x1x2x128xf32> to vector<2x128xf32>
    %13 = arith.maximumf %6, %8 : vector<2x128xf32>
    %14 = arith.maximumf %13, %10 : vector<2x128xf32>
    %15 = arith.maximumf %14, %12 : vector<2x128xf32>
    %16 = arith.subf %6, %15 : vector<2x128xf32>
    %17 = arith.subf %8, %15 : vector<2x128xf32>
    %18 = arith.subf %10, %15 : vector<2x128xf32>
    %19 = arith.subf %12, %15 : vector<2x128xf32>
    %20 = math.exp %16 : vector<2x128xf32>
    %21 = math.exp %17 : vector<2x128xf32>
    %22 = math.exp %18 : vector<2x128xf32>
    %23 = math.exp %19 : vector<2x128xf32>
    %24 = arith.addf %20, %21 : vector<2x128xf32>
    %25 = arith.addf %24, %22 : vector<2x128xf32>
    %26 = arith.addf %25, %23 : vector<2x128xf32>
    %cst = arith.constant 0.000000e+00 : f32
    %27 = vector.broadcast %cst : f32 to vector<2x128xf32>
    %cst_16 = arith.constant 0.000000e+00 : f32
    %28 = vector.broadcast %cst_16 : f32 to vector<2x128xf32>
    %cst_17 = arith.constant 0.000000e+00 : f32
    %29 = vector.broadcast %cst_17 : f32 to vector<2x128xf32>
    %c0_i32_18 = arith.constant 0 : i32
    %30 = vector.broadcast %c0_i32_18 : i32 to vector<2x128xi32>
    %31 = arith.cmpi eq, %4, %30 : vector<2x128xi32>
    %32 = arith.select %31, %16, %27 : vector<2x128xi1>, vector<2x128xf32>
    %33 = arith.select %31, %20, %28 : vector<2x128xi1>, vector<2x128xf32>
    %cst_19 = arith.constant 1.000000e-01 : f32
    %34 = vector.broadcast %cst_19 : f32 to vector<2x128xf32>
    %35 = arith.select %31, %34, %29 : vector<2x128xi1>, vector<2x128xf32>
    %c1_i32 = arith.constant 1 : i32
    %36 = vector.broadcast %c1_i32 : i32 to vector<2x128xi32>
    %37 = arith.cmpi eq, %4, %36 : vector<2x128xi32>
    %38 = arith.select %37, %17, %32 : vector<2x128xi1>, vector<2x128xf32>
    %39 = arith.select %37, %21, %33 : vector<2x128xi1>, vector<2x128xf32>
    %cst_20 = arith.constant 2.000000e-01 : f32
    %40 = vector.broadcast %cst_20 : f32 to vector<2x128xf32>
    %41 = arith.select %37, %40, %35 : vector<2x128xi1>, vector<2x128xf32>
    %c2_i32 = arith.constant 2 : i32
    %42 = vector.broadcast %c2_i32 : i32 to vector<2x128xi32>
    %43 = arith.cmpi eq, %4, %42 : vector<2x128xi32>
    %44 = arith.select %43, %18, %38 : vector<2x128xi1>, vector<2x128xf32>
    %45 = arith.select %43, %22, %39 : vector<2x128xi1>, vector<2x128xf32>
    %cst_21 = arith.constant 3.000000e-01 : f32
    %46 = vector.broadcast %cst_21 : f32 to vector<2x128xf32>
    %47 = arith.select %43, %46, %41 : vector<2x128xi1>, vector<2x128xf32>
    %c3_i32 = arith.constant 3 : i32
    %48 = vector.broadcast %c3_i32 : i32 to vector<2x128xi32>
    %49 = arith.cmpi eq, %4, %48 : vector<2x128xi32>
    %50 = arith.select %49, %19, %44 : vector<2x128xi1>, vector<2x128xf32>
    %51 = arith.select %49, %23, %45 : vector<2x128xi1>, vector<2x128xf32>
    %cst_22 = arith.constant 4.000000e-01 : f32
    %52 = vector.broadcast %cst_22 : f32 to vector<2x128xf32>
    %53 = arith.select %49, %52, %47 : vector<2x128xi1>, vector<2x128xf32>
    %54 = math.log %26 : vector<2x128xf32>
    %55 = arith.subf %50, %54 : vector<2x128xf32>
    %56 = tpu.reciprocal %26 : vector<2x128xf32> -> vector<2x128xf32>
    %57 = arith.mulf %51, %56 : vector<2x128xf32>
    %cst_23 = arith.constant 1.000000e+00 : f32
    %58 = vector.broadcast %cst_23 : f32 to vector<2x128xf32>
    %59 = arith.subf %58, %57 : vector<2x128xf32>
    %cst_24 = arith.constant 1.000000e+00 : f32
    %60 = vector.broadcast %cst_24 : f32 to vector<2x128xf32>
    %61 = arith.mulf %60, %59 : vector<2x128xf32>
    %62 = arith.mulf %61, %59 : vector<2x128xf32>
    %c0_25 = arith.constant 0 : index
    %c0_26 = arith.constant 0 : index
    %c0_27 = arith.constant 0 : index
    %63 = vector.load %arg4[%c0_25, %c0_26, %c0_27] : memref<1x2x128xf32, #tpu.memory_space<vmem>>, vector<1x2x128xf32>
    %64 = vector.shape_cast %63 : vector<1x2x128xf32> to vector<2x128xf32>
    %65 = arith.mulf %53, %55 : vector<2x128xf32>
    %66 = arith.mulf %62, %65 : vector<2x128xf32>
    %67 = arith.subf %64, %66 : vector<2x128xf32>
    %c0_28 = arith.constant 0 : index
    %c0_29 = arith.constant 0 : index
    %c0_30 = arith.constant 0 : index
    %68 = vector.load %arg4[%c0_28, %c0_29, %c0_30] : memref<1x2x128xf32, #tpu.memory_space<vmem>>, vector<1x2x128xf32>
    %69 = vector.shape_cast %68 : vector<1x2x128xf32> to vector<2x128xf32>
    %70 = vector.shape_cast %67 : vector<2x128xf32> to vector<1x2x128xf32>
    tpu.vector_store %arg4[%c0_28, %c0_29, %c0_30], %70 {strides = array<i32>} : memref<1x2x128xf32, #tpu.memory_space<vmem>>, vector<1x2x128xf32>,
    return
  }
  func.func @transform_0(%arg0: i32, %arg1: i32) -> (i32, i32, i32, i32) {
    %c0_i32 = arith.constant 0 : i32
    %c0_i32_0 = arith.constant 0 : i32
    %c0_i32_1 = arith.constant 0 : i32
    return %arg0, %c0_i32, %arg1, %c0_i32_0 : i32, i32, i32, i32
  }
  func.func @transform_1(%arg0: i32, %arg1: i32) -> (i32, i32, i32) {
    %c0_i32 = arith.constant 0 : i32
    %c0_i32_0 = arith.constant 0 : i32
    return %arg0, %arg1, %c0_i32 : i32, i32, i32
  }
  func.func @transform_2(%arg0: i32, %arg1: i32) -> (i32, i32, i32) {
    %c0_i32 = arith.constant 0 : i32
    %c0_i32_0 = arith.constant 0 : i32
    %c0_i32_1 = arith.constant 0 : i32
    return %arg0, %c0_i32, %c0_i32_0 : i32, i32, i32
  }
}

</mosaic_0001>

<bundles_post_ra>
// kernel: tpu_custom_call.1
= control target key start
LH: loop header
LB: loop body
LE: loop exit
PB: predicated region body
PF: predicated region fallthrough
CT: control target
= control target key end

     0   :  { %7 = vsyncpa [#allocation3], 0  ;;  %s887_s0 = inlined_call_operand.hbm [shape: f32[2,4,2,128], index: 0, kind: input, shape index: {}]   ;;  %s888_s1 = inlined_call_operand.hbm [shape: s32[2,2,128], index: 1, kind: input, shape index: {}]   ;;  %s889_s2 = inlined_call_operand.hbm [shape: f32[2,2,128], index: 2, kind: output, shape index: {}]  }
   0x1   :  { %9 = vsyncpa [#allocation3 + $0x1], 0 }
   0x2   :  { %10 = vsyncpa [#allocation6], 0 }
   0x3   :  { %12 = vsyncpa [#allocation6 + $0x1], 0 }
   0x4   :  { %13 = vsyncpa [#allocation4], 0 }
   0x5   :  { %15 = vsyncpa [#allocation4 + $0x1], 0  ;;  %s666_s9 = smov 0   ;;  %s668_s10 = smov 0  }
   0x6   :  { %s670_s11 = smov 0   ;;  %s672_s12 = smov 0  }
   0x7   :  { %s674_s13 = smov 0   ;;  %s676_s14 = smov 0  }
   0x8 LB: > { %s394_s15 = sadd.s32 4294967295, %s643_s14   ;;  %s395_s16 = sadd.s32 4294967294, %s643_s14   ;;  %s643_s14 = sphi %s676_s14, %s21_s14   ;;  %s639_s13 = sphi %s674_s13, %s908_s13   ;;  %s635_s12 = sphi %s672_s12, %s907_s12   ;;  %s631_s11 = sphi %s670_s11, %s906_s11   ;;  %s627_s10 = sphi %s668_s10, %s905_s10   ;;  %s623_s9 = sphi %s666_s9, %s904_s9  }
   0x9   : > { %s33_s17 = sadd.s32 1, %s639_s13  ;;  %s42_s18 = sadd.s32 1, %s631_s11 }
   0xa   : > { %p35_p0 = scmp.ge.s32.totalorder %s33_s17, 2  ;;  %p49_p1 = scmp.ne.s32.totalorder %s631_s11, %s627_s10 }
   0xb   : > { %p50_p2 = scmp.eq.s32.totalorder %s643_s14, 0  ;;  %p55_p3 = scmp.ne.s32.totalorder %s627_s10, %s623_s9 }
   0xc   : > { %s910_s17 = smov (%p35_p0, %s33_s17), 0  ;;  %p56_p5 = scmp.eq.s32.totalorder %s394_s15, 0 }
   0xd   : > { %p707_p4 = por %p50_p2, %p49_p1  ;;  %s37_s20 = ssub.s32 %s639_s13, %s910_s17 }
   0xe   : > { %p107_p6 = scmp.eq.s32.totalorder %s394_s15, 1  ;;  %p40_p7 = scmp.eq.s32.totalorder %s37_s20, 0 }
   0xf   : > { %p713_p8 = por %p56_p5, %p55_p3  ;;  %p113_p10 = scmp.eq.s32.totalorder %s395_s16, 1 }
  0x10   : > { %p717_p9 = por %p107_p6, %p49_p1  ;;  %p432_p13 = scmp.lt.s32.totalorder %s643_s14, 2 }
  0x11   : > { %s893_s21 = scalar_select %p713_p8, 1, 0 }
  0x12   : > { %s894_s22 = scalar_select %p717_p9, 1, 0 }
  0x13   : > { %s722_s23 = scalar_select %p40_p7, %s631_s11, %s42_s18  }
  0x14   : > { %p724_p11 = por %p113_p10, %p55_p3  ;;  %s731_s25 = sand.u32 1, %s631_s11  }
  0x15   : > { %s398_s26 = sshll.u32 %s731_s25, 3  ;;  %s414_s27 = sshll.u32 %s639_s13, 7 }
  0x16   : > { %s895_s24 = scalar_select %p724_p11, 1, 0 }
  0x17   : > { %s738_s30 = scalar_lea.hbm %s887_s0, %s414_s27  ;;  %s137_s3 = scalar_lea.vmem [#allocation2], %s398_s26 }
  0x18   : > { %s145_s4 = sshll.u32 %s137_s3, 4  ;;  %p744_p0 = pnand %p432_p13, %p707_p4  ;;  %s740_s4 = int_to_ptr.vmem [resolvable:$true] %s145_s4 }
  0x19   : > { %s134_s6 = scalar_lea.sflag [#allocation3], %s731_s25  ;;  %s497_s7 = scalar_lea.hbm %s738_s30, 128 }
  0x1a   : > { %p498_p2 = scmp.ne.s32.totalorder %s738_s30, %s497_s7  ;;  %p499_p3 = pneg %p744_p0 }
  0x1b   : > { %s502_s16 = scalar_lea.hbm %s887_s0, 256  ;;  %p503_p4 = scmp.lt.u32.totalorder %s738_s30, %s887_s0 }
  0x1c   : > { %p500_p5 = pnand %p499_p3, %p498_p2  ;;  %p504_p7 = scmp.lt.u32.totalorder %s502_s16, %s497_s7 }
  0x1d   : > { %p506_p13 = scmp.lt.u32.totalorder %s497_s7, %s738_s30 }
  0x1e   : > { %p501_p6 = pneg %p500_p5  ;;  %p505_p10 = por %p504_p7, %p503_p4 }
  0x20   : > { %p507_p12 = por %p506_p13, %p505_p10 }
  0x22   : > { %p508_p1 = pnand %p507_p12, %p501_p6 }
  0x24   : > { %511 = shalt.err (!%p508_p1)
}
  0x25   : > { %s512_s20 = scalar_lea.vmem %s740_s4, 128  ;;  %s645_s26 = smov [#allocation2]  }
  0x26   : > { %p513_p2 = scmp.ne.s32.totalorder %s740_s4, %s512_s20  ;;  %s517_s27 = sshll.u32 %s645_s26, 4  ;;  %s518_s27 = int_to_ptr.vmem [resolvable:$false] %s517_s27 }
  0x27   : > { %s519_s28 = scalar_lea.vmem %s518_s27, 256  ;;  %p520_p9 = scmp.lt.s32.totalorder %s740_s4, %s518_s27 }
  0x28   : > { %p515_p5 = pnand %p513_p2, %p499_p3  ;;  %p521_p4 = scmp.lt.s32.totalorder %s519_s28, %s512_s20 }
  0x2a   : > { %p516_p11 = pneg %p515_p5  ;;  %p522_p7 = por %p521_p4, %p520_p9 }
  0x2c   : > { %p523_p10 = pnand %p522_p7, %p516_p11 }
  0x2e   : > { %526 = shalt.err (!%p523_p10)
}
  0x2f   : > { %s646_s29 = smov 32   ;;  %s647_s3 = smov 2  }
  0x30   : > { %424 = dma.hbm_to_vmem [thread:$0]  (!%p744_p0), %s738_s30, 128, %s740_s4, %s134_s6, %s646_s29, %s646_s29, %s647_s3  }
  0x31   : > { %p172_p12 = scmp.lt.s32.totalorder %s643_s14, 3  ;;  %s401_s7 = sshll.u32 %s731_s25, 1 }
  0x32   : > { %s402_s8 = sshll.u32 %s639_s13, 5  ;;  %p897_p9 = scmp.ge.s32.totalorder %s643_s14, 1 }
  0x33   : > { %s789_s19 = scalar_lea.hbm %s888_s1, %s402_s8  ;;  %s159_s20 = scalar_lea.vmem [#allocation5], %s401_s7 }
  0x34   : > { %p782_p11 = pnand %p897_p9, %p172_p12  ;;  %s167_s26 = sshll.u32 %s159_s20, 4  ;;  %s168_s26 = int_to_ptr.vmem [resolvable:$true] %s167_s26 }
  0x35   : > { %s156_s30 = scalar_lea.sflag [#allocation6], %s731_s25  ;;  %s527_s4 = scalar_lea.hbm %s789_s19, 32 }
  0x36   : > { %s898_s15 = scalar_select %p782_p11, 1, 0 }
  0x37   : > { %p528_p1 = scmp.ne.s32.totalorder %s789_s19, %s527_s4  ;;  %s532_s28 = scalar_lea.hbm %s888_s1, 64 }
  0x38   : > { %p533_p2 = scmp.lt.u32.totalorder %s789_s19, %s888_s1  ;;  %p534_p5 = scmp.lt.u32.totalorder %s532_s28, %s527_s4 }
  0x39   : > { %p530_p6 = pnand %p528_p1, %p499_p3  ;;  %p536_p7 = scmp.lt.u32.totalorder %s527_s4, %s789_s19 }
  0x3a   : > { %p535_p4 = por %p534_p5, %p533_p2 }
  0x3b   : > { %p531_p13 = pneg %p530_p6 }
  0x3c   : > { %p537_p10 = por %p536_p7, %p535_p4 }
  0x3e   : > { %p538_p12 = pnand %p537_p10, %p531_p13 }
  0x40   : > { %541 = shalt.err (!%p538_p12)
}
  0x41   : > { %s542_s25 = scalar_lea.vmem %s168_s26, 32  ;;  %s648_s7 = smov [#allocation5]  }
  0x42   : > { %p543_p9 = scmp.ne.s32.totalorder %s168_s26, %s542_s25  ;;  %s547_s8 = sshll.u32 %s648_s7, 4  ;;  %s548_s8 = int_to_ptr.vmem [resolvable:$false] %s547_s8 }
  0x43   : > { %s549_s16 = scalar_lea.vmem %s548_s8, 64  ;;  %p550_p8 = scmp.lt.s32.totalorder %s168_s26, %s548_s8 }
  0x44   : > { %p545_p1 = pnand %p543_p9, %p499_p3  ;;  %p551_p11 = scmp.lt.s32.totalorder %s549_s16, %s542_s25 }
  0x46   : > { %p546_p6 = pneg %p545_p1  ;;  %p552_p2 = por %p551_p11, %p550_p8 }
  0x48   : > { %p553_p5 = pnand %p552_p2, %p546_p6 }
  0x4a   : > { %556 = shalt.err (!%p553_p5)
}
  0x4b   : > { %427 = dma.hbm_to_vmem [thread:$0]  (!%p744_p0), %s789_s19, 32, %s168_s26, %s156_s30  }
  0x4c   : > { %p899_p13 = scmp.ne.s32.totalorder %s898_s15, 0 }
  0x4d   : > { %s814_s18 = sand.u32 (!%p899_p13), 1, %s627_s10   ;;  %p900_p3 = scmp.ne.s32.totalorder (!%p899_p13), %s893_s21, 0 }
  0x4e   : > { %176 = sbr.rel (%p899_p13) target bundleno = 155 (0x9b), region = 28  ;;  %s404_s20 = sshll.u32 (!%p899_p13), %s814_s18, 3 }
  0x4f   : > { %s179_s4 = scalar_lea.sflag (!%p899_p13), [#allocation3], %s814_s18  ;;  %s182_s6 = scalar_lea.vmem (!%p899_p13), [#allocation2], %s404_s20 }
  0x55   : > { %610 = dma.done.wait (%p900_p3), %s179_s4, 128  }
  0x56   : > { %612 = vsyncadd (%p900_p3), %s179_s4, 4294967168  ;;  %s405_s5 = sshll.u32 %s814_s18, 1  ;;  %s188_s15 = scalar_lea.sflag [#allocation6], %s814_s18 }
  0x57   : > { %s191_s19 = scalar_lea.vmem [#allocation5], %s405_s5 }
  0x58   : > { %614 = dma.done.wait (%p900_p3), %s188_s15, 32  }
  0x59   : > { %616 = vsyncadd (%p900_p3), %s188_s15, 4294967264  ;;  %s828_s26 = scalar_lea.vmem [#allocation7], %s405_s5  ;;  %v649_v0 = vmov 0.0   ;;  %v223_v1 = vld [vmem:[%s182_s6] sm:$0x3]  ;;  %s411_s21 = sshll.u32 %s635_s12, 5 }
  0x5a   : > { %221 = vst [vmem:[%s828_s26] sm:$0x3] %v649_v0  ;;  %v407_v2 = vld [vmem:[%s182_s6 + $0x2] sm:$0x3]  ;;  %v408_v3 = vld [vmem:[%s182_s6 + $0x4] sm:$0x3]  ;;  %s290_s30 = sshll.u32 %s828_s26, 4  ;;  %s837_s29 = scalar_lea.hbm %s889_s2, %s411_s21  ;;  %s839_s30 = int_to_ptr.vmem [resolvable:$true] %s290_s30 }
  0x5b   : > { %v230_v4 = vmax.f32 %v223_v1, %v407_v2  ;;  %v409_v5 = vld [vmem:[%s182_s6 + $0x6] sm:$0x3]  ;;  %v222_v19 = vld [vmem:[%s191_s19] sm:$0x3]  ;;  %s277_s3 = scalar_lea.sflag [#allocation4], %s814_s18  ;;  %s557_s25 = scalar_lea.vmem %s839_s30, 32 }
  0x5c   : > { %vm248_vm0 = vcmp.eq.s32.totalorder %v222_v19, 0  ;;  %vm252_vm1 = vcmp.eq.s32.totalorder %v222_v19, 1  ;;  %vm256_vm2 = vcmp.eq.s32.totalorder %v222_v19, 2  ;;  %vm260_vm3 = vcmp.eq.s32.totalorder %v222_v19, 3  ;;  %p558_p8 = scmp.ne.s32.totalorder %s839_s30, %s557_s25  ;;  %p901_p0 = scmp.ne.s32.totalorder %s894_s22, 0 }
  0x5d   : > { %v231_v6 = vmax.f32 %v230_v4, %v408_v3  ;;  %v251_v26 = vsel %vm248_vm0, 0.1, %v649_v0  ;;  %s650_s12 = smov [#allocation7]  }
  0x5e   : > { %v255_v29 = vsel %vm252_vm1, 0.2, %v251_v26  ;;  %p559_p11 = pnand %p558_p8, %p901_p0  ;;  %s561_s7 = sshll.u32 %s650_s12, 4  ;;  %s562_s7 = int_to_ptr.vmem [resolvable:$false] %s561_s7 }
  0x5f   : > { %v232_v7 = vmax.f32 %v231_v6, %v409_v5  ;;  %v259_v32 = vsel %vm256_vm2, 0.3, %v255_v29  ;;  %s563_s8 = scalar_lea.vmem %s562_s7, 64  ;;  %p564_p7 = scmp.lt.s32.totalorder %s839_s30, %s562_s7 }
  0x60   : > { %v263_v38 = vsel %vm260_vm3, 0.4, %v259_v32  ;;  %p560_p4 = pneg %p559_p11  ;;  %p565_p10 = scmp.lt.s32.totalorder %s563_s8, %s557_s25 }
  0x61   : > { %v233_v8 = vsub.f32 %v223_v1, %v232_v7  ;;  %v234_v9 = vsub.f32 %v407_v2, %v232_v7  ;;  %v235_v10 = vsub.f32 %v408_v3, %v232_v7  ;;  %v236_v11 = vsub.f32 %v409_v5, %v232_v7  ;;  %v271_v44 = vld [vmem:[%s828_s26] sm:$0x3] }
  0x62   : > { %p566_p12 = por %p565_p10, %p564_p7 }
  0x63   : > { %v237_v12 = vmul.f32 1.442695, %v233_v8  ;;  %v239_v13 = vmul.f32 1.442695, %v234_v9  ;;  %v241_v14 = vmul.f32 1.442695, %v235_v10 }
  0x64   : > { %v243_v15 = vmul.f32 1.442695, %v236_v11  ;;  %v249_v25 = vsel %vm248_vm0, %v233_v8, 0.0  ;;  %p567_p9 = pnand %p566_p12, %p560_p4 }
  0x65   : > { %485 = vpow2.f32 %v237_v12  ;;  %v253_v28 = vsel %vm252_vm1, %v234_v9, %v249_v25 }
  0x66   : > { %487 = vpow2.f32 %v239_v13  ;;  %v257_v31 = vsel %vm256_vm2, %v235_v10, %v253_v28 }
  0x67   : > { %489 = vpow2.f32 %v241_v14  ;;  %v261_v35 = vsel %vm260_vm3, %v236_v11, %v257_v31 }
  0x68   : > { %491 = vpow2.f32 %v243_v15 }
  0x6f   : > { %v486_v16 = vpop.eup %485 }
  0x70   : > { %v488_v17 = vpop.eup %487  ;;  %v250_v24 = vsel %vm248_vm0, %v486_v16, 0.0 }
  0x71   : > { %v490_v18 = vpop.eup %489  ;;  %v245_v20 = vadd.f32 %v488_v17, %v486_v16  ;;  %v254_v27 = vsel %vm252_vm1, %v488_v17, %v250_v24 }
  0x72   : > { %v492_v21 = vpop.eup %491  ;;  %v258_v30 = vsel %vm256_vm2, %v490_v18, %v254_v27 }
  0x73   : > { %v246_v22 = vadd.f32 %v490_v18, %v245_v20  ;;  %v262_v33 = vsel %vm260_vm3, %v492_v21, %v258_v30 }
  0x75   : > { %v247_v23 = vadd.f32 %v492_v21, %v246_v22 }
  0x77   : > { %493 = vlog2.f32 %v247_v23 }
  0x78   : > { %495 = vrcp.f32 %v247_v23 }
  0x81   : > { %v494_v34 = vpop.eup %493 }
  0x82   : > { %v496_v36 = vpop.eup %495  ;;  %v265_v37 = vmul.f32 0.6931472, %v494_v34 }
  0x83   : > { %v268_v39 = vmul.f32 %v496_v36, %v262_v33 }
  0x84   : > { %v266_v40 = vsub.f32 %v261_v35, %v265_v37 }
  0x85   : > { %v269_v41 = vsub.f32 1.0, %v268_v39 }
  0x86   : > { %v272_v42 = vmul.f32 %v266_v40, %v263_v38 }
  0x87   : > { %v270_v43 = vmul.f32 %v269_v41, %v269_v41 }
  0x89   : > { %v273_v45 = vmul.f32 %v272_v42, %v270_v43 }
  0x8b   : > { %v274_v46 = vsub.f32 %v271_v44, %v273_v45 }
  0x8d   : > { %275 = vst [vmem:[%s828_s26] sm:$0x3] %v274_v46 }
  0x8e   : > { %570 = shalt.err (!%p567_p9)
}
  0x8f   : > { %s571_s16 = scalar_lea.hbm %s837_s29, 32  ;;  %s575_s4 = scalar_lea.hbm %s889_s2, 64 }
  0x90   : > { %p572_p1 = scmp.ne.s32.totalorder %s837_s29, %s571_s16  ;;  %p576_p5 = scmp.lt.u32.totalorder %s837_s29, %s889_s2 }
  0x91   : > { %p577_p13 = scmp.lt.u32.totalorder %s575_s4, %s571_s16  ;;  %p579_p8 = scmp.lt.u32.totalorder %s571_s16, %s837_s29 }
  0x92   : > { %p573_p6 = pnand %p572_p1, %p901_p0 }
  0x93   : > { %p578_p3 = por %p577_p13, %p576_p5 }
  0x94   : > { %p574_p2 = pneg %p573_p6 }
  0x95   : > { %p580_p11 = por %p579_p8, %p578_p3 }
  0x97   : > { %p581_p4 = pnand %p580_p11, %p574_p2 }
  0x99   : > { %584 = shalt.err (!%p581_p4)
}
  0x9a   : > { %419 = dma.vmem_to_hbm [thread:$0]  (%p901_p0), %s839_s30, 32, %s837_s29, %s277_s3  }
  0x9b PF: > { %s302_s15 = sand.u32 1, %s623_s9   ;;  %p902_p7 = scmp.ne.s32.totalorder %s895_s24, 0 }
  0x9c   : > { %p903_p10 = scmp.ge.s32.totalorder %s643_s14, 2  ;;  %s303_s19 = scalar_lea.sflag [#allocation4], %s302_s15 }
  0x9e   : > { %p429_p12 = pnand %p903_p10, %p902_p7 }
  0xa0   : > { %618 = dma.done.wait (!%p429_p12), %s303_s19, 32  }
  0xa1   : > { %620 = vsyncadd (!%p429_p12), %s303_s19, 4294967264  ;;  %s21_s14 = sadd.s32 1, %s643_s14   ;;  %s904_s9 = smov %s627_s10 }
  0xa2   : > { %p18_p9 = scmp.ge.s32.totalorder %s21_s14, 4   ;;  %s905_s10 = smov %s631_s11 }
  0xa3   : > { %s906_s11 = smov %s722_s23  ;;  %s907_s12 = smov %s639_s13 }
  0xa4   : > { %s908_s13 = smov %s910_s17  ;;  %20 = sbr.rel (!%p18_p9) target bundleno = 8 (0x8), region = 93 }
  0xab   :  { %308 = vsyncpa [#allocation3], 1 }
  0xac   :  { %310 = vsyncpa [#allocation3 + $0x1], 1 }
  0xad   :  { %311 = vsyncpa [#allocation6], 1 }
  0xae   :  { %313 = vsyncpa [#allocation6 + $0x1], 1 }
  0xaf   :  { %314 = vsyncpa [#allocation4], 1 }
  0xb0   :  { %316 = vsyncpa [#allocation4 + $0x1], 1 }

</bundles_post_ra>
